<compile_context>
chip_gen: v6e
topology: v6e:2x2x1
jax: 0.10.0
libtpu: 0.0.40
codegen_flags: <defaults>
</compile_context>

<pallas_src>
import functools

import jax
import jax.numpy as jnp
from jax.experimental import pallas as pl
from jax.experimental.pallas import tpu as pltpu  # noqa: F401  (TPU backend)


def _bn_eval_kernel(x_ref, gamma_ref, beta_ref, mean_ref, var_ref, o_ref, *, eps):
    """Inference-mode BatchNorm2d.

    x_ref, o_ref: (B, C, H*W)   -- whole tensor resident in VMEM, lanes = H*W
    gamma/beta/mean/var refs: (C, 1) per-channel columns
    """
    x = x_ref[...].astype(jnp.float32)                              # (B, C, HW)
    scale = gamma_ref[...] / (jnp.sqrt(var_ref[...]) + eps)         # (C, 1)
    shift = beta_ref[...] - mean_ref[...] * scale                   # (C, 1)
    o_ref[...] = (x * scale[None] + shift[None]).astype(o_ref.dtype)


def _bn_train_kernel(x_ref, gamma_ref, beta_ref, o_ref, mean_ref, var_ref, *, eps):
    """Training-mode BatchNorm2d: batch statistics over (B, H, W) per channel.

    x_ref, o_ref: (B, C, H*W);  gamma/beta refs: (C, 1)
    mean_ref / var_ref outputs: (C, 1) batch mean and biased batch variance.
    """
    x = x_ref[...].astype(jnp.float32)                              # (B, C, HW)
    inv_n = 1.0 / (x.shape[0] * x.shape[2])
    # Reduce lanes first (XLU), then the small leading batch dim.
    s = jnp.sum(x, axis=2, keepdims=True)                           # (B, C, 1)
    mean = jnp.sum(s, axis=0, keepdims=True) * inv_n                # (1, C, 1)
    centered = x - mean                                             # (B, C, HW)
    sq = jnp.sum(centered * centered, axis=2, keepdims=True)        # (B, C, 1)
    var = jnp.sum(sq, axis=0, keepdims=True) * inv_n                # (1, C, 1)
    scale = gamma_ref[...][None] / (jnp.sqrt(var) + eps)            # (1, C, 1)
    o_ref[...] = (centered * scale + beta_ref[...][None]).astype(o_ref.dtype)
    mean_ref[...] = mean[0]                                         # (C, 1)
    var_ref[...] = var[0]                                           # (C, 1)


def _col(v, c):
    return v.reshape(c, 1).astype(jnp.float32)


def batchnorm2d_eval(x_nchw, weight, bias, running_mean, running_var, eps):
    B, C, H, W = x_nchw.shape
    HW = H * W
    x3 = x_nchw.reshape(B, C, HW)                 # contiguous view, free
    out = pl.pallas_call(
        functools.partial(_bn_eval_kernel, eps=eps),
        out_shape=jax.ShapeDtypeStruct((B, C, HW), x_nchw.dtype),
        grid=(1,),
        in_specs=[
            pl.BlockSpec((B, C, HW), lambda i: (0, 0, 0)),
            pl.BlockSpec((C, 1), lambda i: (0, 0)),
            pl.BlockSpec((C, 1), lambda i: (0, 0)),
            pl.BlockSpec((C, 1), lambda i: (0, 0)),
            pl.BlockSpec((C, 1), lambda i: (0, 0)),
        ],
        out_specs=pl.BlockSpec((B, C, HW), lambda i: (0, 0, 0)),
    )(x3, _col(weight, C), _col(bias, C), _col(running_mean, C), _col(running_var, C))
    return out.reshape(B, C, H, W)


def batchnorm2d_train(x_nchw, weight, bias, eps):
    """Returns (y, batch_mean, batch_var) — biased variance, matching the spec."""
    B, C, H, W = x_nchw.shape
    HW = H * W
    x3 = x_nchw.reshape(B, C, HW)
    y, mean, var = pl.pallas_call(
        functools.partial(_bn_train_kernel, eps=eps),
        out_shape=(
            jax.ShapeDtypeStruct((B, C, HW), x_nchw.dtype),
            jax.ShapeDtypeStruct((C, 1), jnp.float32),
            jax.ShapeDtypeStruct((C, 1), jnp.float32),
        ),
        grid=(1,),
        in_specs=[
            pl.BlockSpec((B, C, HW), lambda i: (0, 0, 0)),
            pl.BlockSpec((C, 1), lambda i: (0, 0)),
            pl.BlockSpec((C, 1), lambda i: (0, 0)),
        ],
        out_specs=(
            pl.BlockSpec((B, C, HW), lambda i: (0, 0, 0)),
            pl.BlockSpec((C, 1), lambda i: (0, 0)),
            pl.BlockSpec((C, 1), lambda i: (0, 0)),
        ),
    )(x3, _col(weight, C), _col(bias, C))
    return y.reshape(B, C, H, W), mean.reshape(C), var.reshape(C)


class PallasBatchNorm2d:
    """Mirror of the PyTorch BatchNorm2d module (affine + running stats)."""

    def __init__(self, num_features, eps=1e-5, momentum=0.1):
        self.num_features = num_features
        self.eps = eps
        self.momentum = momentum
        self.weight = jnp.ones((num_features,), jnp.float32)
        self.bias = jnp.zeros((num_features,), jnp.float32)
        self.running_mean = jnp.zeros((num_features,), jnp.float32)
        self.running_var = jnp.ones((num_features,), jnp.float32)
        self.num_batches_tracked = jnp.array(0, jnp.int32)
        self.training = True  # PyTorch modules default to training mode

    def train(self):
        self.training = True
        return self

    def eval(self):
        self.training = False
        return self

    def __call__(self, x_nchw):
        if self.training:
            y, mean, var = batchnorm2d_train(x_nchw, self.weight, self.bias, self.eps)
            m = self.momentum
            self.num_batches_tracked = self.num_batches_tracked + 1
            self.running_mean = (1.0 - m) * self.running_mean + m * mean
            self.running_var = (1.0 - m) * self.running_var + m * var
            return y
        return batchnorm2d_eval(x_nchw, self.weight, self.bias,
                                self.running_mean, self.running_var, self.eps)


def reference_bn(x, weight, bias, mean, var, eps):
    """Plain-JAX reference of the spec's formula: (x-m)/(sqrt(v)+eps)*w + b."""
    m = mean[None, :, None, None]
    v = var[None, :, None, None]
    return (x - m) / (jnp.sqrt(v) + eps) * weight[None, :, None, None] \
        + bias[None, :, None, None]


if __name__ == "__main__":
    key = jax.random.PRNGKey(0)
    kx, kw, kb, km, kv = jax.random.split(key, 5)

    B, C, H, W = 2, 4, 16, 16
    x = jax.random.normal(kx, (B, C, H, W), jnp.float32)

    bn = PallasBatchNorm2d(C, eps=1e-5, momentum=0.1)
    # Non-trivial affine params / running stats so every term is exercised.
    bn.weight = 1.0 + 0.1 * jax.random.normal(kw, (C,), jnp.float32)
    bn.bias = 0.1 * jax.random.normal(kb, (C,), jnp.float32)
    bn.running_mean = 0.1 * jax.random.normal(km, (C,), jnp.float32)
    bn.running_var = jax.random.uniform(kv, (C,), jnp.float32, minval=0.5, maxval=1.5)
    rm0, rv0 = bn.running_mean, bn.running_var

    # ---- training mode (PyTorch default for a fresh module) ----
    y_train = jax.block_until_ready(bn(x))
    batch_mean = jnp.mean(x, axis=(0, 2, 3))
    batch_var = jnp.var(x, axis=(0, 2, 3))                 # unbiased=False
    ref_train = reference_bn(x, bn.weight, bn.bias, batch_mean, batch_var, bn.eps)
    assert y_train.shape == (B, C, H, W)
    assert jnp.allclose(y_train, ref_train, atol=1e-4, rtol=1e-4), "train-mode mismatch"
    m = bn.momentum
    assert jnp.allclose(bn.running_mean, (1 - m) * rm0 + m * batch_mean,
                        atol=1e-5, rtol=1e-5), "running_mean mismatch"
    assert jnp.allclose(bn.running_var, (1 - m) * rv0 + m * batch_var,
                        atol=1e-5, rtol=1e-5), "running_var mismatch"
    assert int(bn.num_batches_tracked) == 1

    # ---- eval mode (uses running statistics) ----
    bn.eval()
    y_eval = jax.block_until_ready(bn(x))
    ref_eval = reference_bn(x, bn.weight, bn.bias, bn.running_mean, bn.running_var, bn.eps)
    assert jnp.allclose(y_eval, ref_eval, atol=1e-4, rtol=1e-4), "eval-mode mismatch"

    print("KERNEL_OK")
</pallas_src>

<mosaic_0001>
module attributes {stable_mosaic.version = 11 : i64} {
  func.func @_bn_train_kernel(%arg0: i32, %arg1: memref<2x4x256xf32, #tpu.memory_space<vmem>>, %arg2: memref<4x1xf32, #tpu.memory_space<vmem>>, %arg3: memref<4x1xf32, #tpu.memory_space<vmem>>, %arg4: memref<2x4x256xf32, #tpu.memory_space<vmem>>, %arg5: memref<4x1xf32, #tpu.memory_space<vmem>>, %arg6: memref<4x1xf32, #tpu.memory_space<vmem>>) attributes {dimension_semantics = [#tpu.dimension_semantics<arbitrary>], iteration_bounds = array<i64: 1>, scalar_prefetch = 0 : i64, scratch_operands = 0 : i64, tpu.core_type = #tpu.core_type<tc>, window_params = [{pipeline_mode = #tpu.pipeline_mode<synchronous>, transform_indices = @transform_0, window_bounds = array<i64: 2, 4, 256>}, {pipeline_mode = #tpu.pipeline_mode<synchronous>, transform_indices = @transform_1, window_bounds = array<i64: 4, 1>}, {pipeline_mode = #tpu.pipeline_mode<synchronous>, transform_indices = @transform_2, window_bounds = array<i64: 4, 1>}, {pipeline_mode = #tpu.pipeline_mode<synchronous>, transform_indices = @transform_3, window_bounds = array<i64: 2, 4, 256>}, {pipeline_mode = #tpu.pipeline_mode<synchronous>, transform_indices = @transform_4, window_bounds = array<i64: 4, 1>}, {pipeline_mode = #tpu.pipeline_mode<synchronous>, transform_indices = @transform_5, window_bounds = array<i64: 4, 1>}]} {
    %c0 = arith.constant 0 : index
    %c0_0 = arith.constant 0 : index
    %c0_1 = arith.constant 0 : index
    %0 = vector.load %arg1[%c0, %c0_0, %c0_1] : memref<2x4x256xf32, #tpu.memory_space<vmem>>, vector<2x4x256xf32>
    %cst = arith.constant dense<0.000000e+00> : vector<2x4xf32>
    %1 = vector.multi_reduction <add>, %0, %cst [2] : vector<2x4x256xf32> to vector<2x4xf32>
    %2 = vector.shape_cast %1 : vector<2x4xf32> to vector<2x4x1xf32>
    %cst_2 = arith.constant dense<0.000000e+00> : vector<4x1xf32>
    %3 = vector.multi_reduction <add>, %2, %cst_2 [0] : vector<2x4x1xf32> to vector<4x1xf32>
    %4 = vector.shape_cast %3 : vector<4x1xf32> to vector<1x4x1xf32>
    %cst_3 = arith.constant 0.001953125 : f32
    %5 = vector.broadcast %cst_3 : f32 to vector<1x4x1xf32>
    %6 = arith.mulf %4, %5 : vector<1x4x1xf32>
    %7 = vector.broadcast %6 : vector<1x4x1xf32> to vector<2x4x256xf32>
    %8 = arith.subf %0, %7 : vector<2x4x256xf32>
    %9 = arith.mulf %8, %8 : vector<2x4x256xf32>
    %cst_4 = arith.constant dense<0.000000e+00> : vector<2x4xf32>
    %10 = vector.multi_reduction <add>, %9, %cst_4 [2] : vector<2x4x256xf32> to vector<2x4xf32>
    %11 = vector.shape_cast %10 : vector<2x4xf32> to vector<2x4x1xf32>
    %cst_5 = arith.constant dense<0.000000e+00> : vector<4x1xf32>
    %12 = vector.multi_reduction <add>, %11, %cst_5 [0] : vector<2x4x1xf32> to vector<4x1xf32>
    %13 = vector.shape_cast %12 : vector<4x1xf32> to vector<1x4x1xf32>
    %cst_6 = arith.constant 0.001953125 : f32
    %14 = vector.broadcast %cst_6 : f32 to vector<1x4x1xf32>
    %15 = arith.mulf %13, %14 : vector<1x4x1xf32>
    %c0_7 = arith.constant 0 : index
    %c0_8 = arith.constant 0 : index
    %16 = vector.load %arg2[%c0_7, %c0_8] : memref<4x1xf32, #tpu.memory_space<vmem>>, vector<4x1xf32>
    %17 = vector.shape_cast %16 : vector<4x1xf32> to vector<1x4x1xf32>
    %18 = math.sqrt %15 : vector<1x4x1xf32>
    %cst_9 = arith.constant 9.99999974E-6 : f32
    %19 = vector.broadcast %cst_9 : f32 to vector<1x4x1xf32>
    %20 = arith.addf %18, %19 : vector<1x4x1xf32>
    %21 = arith.divf %17, %20 : vector<1x4x1xf32>
    %22 = vector.broadcast %21 : vector<1x4x1xf32> to vector<2x4x256xf32>
    %23 = arith.mulf %8, %22 : vector<2x4x256xf32>
    %c0_10 = arith.constant 0 : index
    %c0_11 = arith.constant 0 : index
    %24 = vector.load %arg3[%c0_10, %c0_11] : memref<4x1xf32, #tpu.memory_space<vmem>>, vector<4x1xf32>
    %25 = vector.shape_cast %24 : vector<4x1xf32> to vector<1x4x1xf32>
    %26 = vector.broadcast %25 : vector<1x4x1xf32> to vector<2x4x256xf32>
    %27 = arith.addf %23, %26 : vector<2x4x256xf32>
    %c0_12 = arith.constant 0 : index
    %c0_13 = arith.constant 0 : index
    %c0_14 = arith.constant 0 : index
    %28 = vector.load %arg4[%c0_12, %c0_13, %c0_14] : memref<2x4x256xf32, #tpu.memory_space<vmem>>, vector<2x4x256xf32>
    tpu.vector_store %arg4[%c0_12, %c0_13, %c0_14], %27 {strides = array<i32>} : memref<2x4x256xf32, #tpu.memory_space<vmem>>, vector<2x4x256xf32>,
    %29 = vector.shape_cast %6 : vector<1x4x1xf32> to vector<4x1xf32>
    %c0_15 = arith.constant 0 : index
    %c0_16 = arith.constant 0 : index
    %30 = vector.load %arg5[%c0_15, %c0_16] : memref<4x1xf32, #tpu.memory_space<vmem>>, vector<4x1xf32>
    tpu.vector_store %arg5[%c0_15, %c0_16], %29 {strides = array<i32>} : memref<4x1xf32, #tpu.memory_space<vmem>>, vector<4x1xf32>,
    %31 = vector.shape_cast %15 : vector<1x4x1xf32> to vector<4x1xf32>
    %c0_17 = arith.constant 0 : index
    %c0_18 = arith.constant 0 : index
    %32 = vector.load %arg6[%c0_17, %c0_18] : memref<4x1xf32, #tpu.memory_space<vmem>>, vector<4x1xf32>
    tpu.vector_store %arg6[%c0_17, %c0_18], %31 {strides = array<i32>} : memref<4x1xf32, #tpu.memory_space<vmem>>, vector<4x1xf32>,
    return
  }
  func.func @transform_0(%arg0: i32) -> (i32, i32, i32) {
    %c0_i32 = arith.constant 0 : i32
    %c0_i32_0 = arith.constant 0 : i32
    %c0_i32_1 = arith.constant 0 : i32
    %c0_i32_2 = arith.constant 0 : i32
    return %c0_i32, %c0_i32_0, %c0_i32_1 : i32, i32, i32
  }
  func.func @transform_1(%arg0: i32) -> (i32, i32) {
    %c0_i32 = arith.constant 0 : i32
    %c0_i32_0 = arith.constant 0 : i32
    %c0_i32_1 = arith.constant 0 : i32
    return %c0_i32, %c0_i32_0 : i32, i32
  }
  func.func @transform_2(%arg0: i32) -> (i32, i32) {
    %c0_i32 = arith.constant 0 : i32
    %c0_i32_0 = arith.constant 0 : i32
    %c0_i32_1 = arith.constant 0 : i32
    return %c0_i32, %c0_i32_0 : i32, i32
  }
  func.func @transform_3(%arg0: i32) -> (i32, i32, i32) {
    %c0_i32 = arith.constant 0 : i32
    %c0_i32_0 = arith.constant 0 : i32
    %c0_i32_1 = arith.constant 0 : i32
    %c0_i32_2 = arith.constant 0 : i32
    return %c0_i32, %c0_i32_0, %c0_i32_1 : i32, i32, i32
  }
  func.func @transform_4(%arg0: i32) -> (i32, i32) {
    %c0_i32 = arith.constant 0 : i32
    %c0_i32_0 = arith.constant 0 : i32
    %c0_i32_1 = arith.constant 0 : i32
    return %c0_i32, %c0_i32_0 : i32, i32
  }
  func.func @transform_5(%arg0: i32) -> (i32, i32) {
    %c0_i32 = arith.constant 0 : i32
    %c0_i32_0 = arith.constant 0 : i32
    %c0_i32_1 = arith.constant 0 : i32
    return %c0_i32, %c0_i32_0 : i32, i32
  }
}

</mosaic_0001>

<bundles_post_ra>
// kernel: tpu_custom_call.1
= control target key start
LH: loop header
LB: loop body
LE: loop exit
PB: predicated region body
PF: predicated region fallthrough
CT: control target
= control target key end

     0   :  { %11 = vsyncpa [#allocation3], 0  ;;  %s290_s0 = inlined_call_operand.hbm [shape: f32[2,4,256], index: 0, kind: input, shape index: {}]   ;;  %s291_s1 = inlined_call_operand.vmem [shape: f32[4,1], index: 1, kind: input, shape index: {}]   ;;  %s292_s2 = inlined_call_operand.vmem [shape: f32[4,1], index: 2, kind: input, shape index: {}]   ;;  %s293_s3 = inlined_call_operand.hbm [shape: f32[2,4,256], index: 3, kind: output, shape index: {0}]   ;;  %s294_s4 = inlined_call_operand.vmem [shape: f32[4,1], index: 4, kind: output, shape index: {1}]   ;;  %s295_s5 = inlined_call_operand.vmem [shape: f32[4,1], index: 5, kind: output, shape index: {2}]  }
   0x1   :  { %12 = vsyncpa [#allocation4], 0  ;;  %s216_s18 = smov [#allocation2]  }
   0x2   :  { %s18_s19 = sshll.u32 %s216_s18, 4  ;;  %s19_s19 = int_to_ptr.vmem [resolvable:$true] %s18_s19 }
   0x3   :  { %s180_s20 = scalar_lea.vmem %s19_s19, 256  ;;  %p185_p1 = scmp.lt.s32.totalorder %s19_s19, %s19_s19 }
   0x4   :  { %p181_p0 = scmp.ne.s32.totalorder %s19_s19, %s180_s20  ;;  %p186_p2 = scmp.lt.s32.totalorder %s180_s20, %s180_s20 }
   0x6   :  { %p187_p3 = por %p186_p2, %p185_p1 }
   0x8   :  { %p188_p4 = pnand %p187_p3, %p181_p0 }
   0xa   :  { %191 = shalt.err (!%p188_p4)
}
   0xb   :  { %s217_s21 = smov 128   ;;  %s218_s22 = smov 8  }
   0xc   :  { %24 = dma.hbm_to_vmem [thread:$0]  %s290_s0, 256, %s19_s19, [#allocation3], %s217_s21, %s217_s21, %s218_s22  }
   0xd   :  { %212 = dma.done.wait [#allocation3], 256  }
   0xe   :  { %213 = vsyncadd [#allocation3], 4294967040  ;;  %vm40_vm0 = vcmask 1043456   ;;  %v32_v0 = vld [vmem:[#allocation2] sm:$0xff]  ;;  %v33_v1 = vld [vmem:[#allocation2 + $0x8] sm:$0xff]  ;;  %v59_v12 = vlaneseq  ;;  %vm130_vm1 = vcmask 3072  }
   0xf   :  { %v36_v2 = vcombine.high %v32_v0, %v32_v0  ;;  %v41_v3 = vsel %vm40_vm0, %v32_v0, 0.0  ;;  %v37_v4 = vcombine.high %v33_v1, %v33_v1  ;;  %v46_v6 = vsel %vm40_vm0, %v33_v1, 0.0  ;;  %v113_v36 = vld [vmem:[%s292_s2] sm:$0xf] }
  0x10   :  { %v219_v10 = vmov 839922192   ;;  %v60_v15 = vshrl.u32 %v59_v12, 7  ;;  %v220_v35 = vmov 0   ;;  %v88_v49 = vld [vmem:[%s291_s1] sm:$0xf] }
  0x11   :  { %v42_v5 = vsel %vm40_vm0, %v36_v2, 0.0  ;;  %v47_v7 = vsel %vm40_vm0, %v37_v4, 0.0  ;;  %v57_v11 = vunpack.c.l.s4 %v219_v10  ;;  %164 = vset.pattern.permute.xlu0 %v220_v35  ;;  %165 = vset.pattern.permute.xlu1 %v220_v35 }
  0x12   :  { %v43_v8 = vadd.f32 %v42_v5, %v41_v3  ;;  %v48_v9 = vadd.f32 %v47_v7, %v46_v6 }
  0x13   :  { %v58_v14 = vunpack.c.0.s8 %v57_v11 }
  0x14   :  { %44 = vadd.xlane.f32.xlu0 %v43_v8 }
  0x15   :  { %v61_v19 = vsub.s32 %v58_v14, %v60_v15 }
  0x18   :  { %49 = vadd.xlane.f32.xlu0 %v48_v9 }
  0x9d   :  { %v45_v13 = vpop.xlane.xlu0 %44 }
  0x9e   :  { %v51_v17 = vsel %vm40_vm0, %v45_v13, 0.0 }
  0xa1   :  { %v50_v16 = vpop.xlane.xlu0 %49 }
  0xa2   :  { %v52_v18 = vsel %vm40_vm0, %v50_v16, 0.0 }
  0xa3   :  { %v53_v20 = vadd.f32 %v52_v18, %v51_v17 }
  0xa5   :  { %v54_v21 = vmul.f32 0.001953125, %v53_v20 }
  0xa7   :  { %v62_v22 = vrot.slane %v54_v21, %v61_v19  ;;  %131 = vst.msk [vmem:[%s294_s4] sm:$0xf] %vm130_vm1, %v54_v21 }
  0xa9   :  { %v65_v23 = vsub.f32 %v33_v1, %v62_v22  ;;  %v64_v24 = vsub.f32 %v32_v0, %v62_v22 }
  0xab   :  { %v66_v25 = vmul.f32 %v64_v24, %v64_v24  ;;  %v67_v26 = vmul.f32 %v65_v23, %v65_v23 }
  0xad   :  { %v70_v27 = vcombine.high %v66_v25, %v66_v25  ;;  %v71_v28 = vcombine.high %v67_v26, %v67_v26  ;;  %v74_v29 = vsel %vm40_vm0, %v66_v25, 0.0  ;;  %v79_v33 = vsel %vm40_vm0, %v67_v26, 0.0 }
  0xaf   :  { %v75_v30 = vsel %vm40_vm0, %v70_v27, 0.0  ;;  %v80_v32 = vsel %vm40_vm0, %v71_v28, 0.0 }
  0xb0   :  { %v76_v31 = vadd.f32 %v75_v30, %v74_v29  ;;  %v81_v34 = vadd.f32 %v80_v32, %v79_v33 }
  0xb2   :  { %77 = vadd.xlane.f32.xlu1 %v76_v31 }
  0xb6   :  { %82 = vadd.xlane.f32.xlu1 %v81_v34 }
  0xc7   :  { %116 = vperm.xlu1 %165, %v113_v36  }
 0x13b   :  { %v78_v37 = vpop.xlane.xlu1 %77 }
 0x13c   :  { %v84_v39 = vsel %vm40_vm0, %v78_v37, 0.0 }
 0x13f   :  { %v83_v38 = vpop.xlane.xlu1 %82 }
 0x140   :  { %v85_v40 = vsel %vm40_vm0, %v83_v38, 0.0 }
 0x141   :  { %v86_v41 = vadd.f32 %v85_v40, %v84_v39 }
 0x143   :  { %v87_v42 = vmul.f32 0.001953125, %v86_v41  ;;  %v117_v52 = vpop.permute.xlu1 %116 }
 0x144   :  { %v124_v55 = vrot.slane %v117_v52, %v61_v19 }
 0x145   :  { %168 = vrsqrt.f32 %v87_v42  ;;  %132 = vst.msk [vmem:[%s295_s5] sm:$0xf] %vm130_vm1, %v87_v42  ;;  %vm91_vm2 = vcmp.eq.f32.partialorder %v87_v42, inf  ;;  %v94_v45 = vand.u32 2147483648, %v87_v42  ;;  %vm93_vm3 = vcmp.eq.f32.partialorder %v87_v42, 0.0  ;;  %s221_s5 = smov [#allocation5]  }
 0x146   :  { %s138_s30 = sshll.u32 %s221_s5, 4  ;;  %s139_s30 = int_to_ptr.vmem [resolvable:$true] %s138_s30 }
 0x147   :  { %s192_s6 = scalar_lea.vmem %s139_s30, 256  ;;  %p197_p6 = scmp.lt.s32.totalorder %s139_s30, %s139_s30 }
 0x148   :  { %p193_p5 = scmp.ne.s32.totalorder %s139_s30, %s192_s6  ;;  %p198_p7 = scmp.lt.s32.totalorder %s192_s6, %s192_s6 }
 0x14a   :  { %p199_p8 = por %p198_p7, %p197_p6 }
 0x14c   :  { %p200_p9 = pnand %p199_p8, %p193_p5 }
 0x152   :  { %v169_v43 = vpop.eup %168 }
 0x153   :  { %v90_v44 = vmul.f32 %v169_v43, %v87_v42 }
 0x155   :  { %v92_v46 = vsel %vm91_vm2, %v87_v42, %v90_v44 }
 0x156   :  { %v95_v47 = vsel %vm93_vm3, %v94_v45, %v92_v46 }
 0x157   :  { %v96_v48 = vadd.f32 1e-05, %v95_v47 }
 0x159   :  { %170 = vrcp.f32 %v96_v48 }
 0x166   :  { %v171_v50 = vpop.eup %170 }
 0x167   :  { %v98_v51 = vmul.f32 %v171_v50, %v88_v49 }
 0x169   :  { %101 = vperm.xlu0 %164, %v98_v51  }
 0x1e4   :  { %v102_v53 = vpop.permute.xlu0 %101 }
 0x1e5   :  { %v109_v54 = vrot.slane %v102_v53, %v61_v19 }
 0x1e7   :  { %v111_v56 = vmul.f32 %v109_v54, %v64_v24  ;;  %v112_v57 = vmul.f32 %v109_v54, %v65_v23 }
 0x1e9   :  { %v126_v58 = vadd.f32 %v124_v55, %v111_v56  ;;  %v127_v59 = vadd.f32 %v124_v55, %v112_v57 }
 0x1eb   :  { %128 = vst [vmem:[#allocation5] sm:$0xff] %v126_v58  ;;  %129 = vst [vmem:[#allocation5 + $0x8] sm:$0xff] %v127_v59 }
 0x1ec   :  { %203 = shalt.err (!%p200_p9)
}
 0x1ed   :  { %144 = dma.vmem_to_hbm [thread:$0]  %s139_s30, 256, %s293_s3, [#allocation4], %s217_s21, %s217_s21, %s218_s22  }
 0x1ee   :  { %214 = dma.done.wait [#allocation4], 256  }
 0x1ef   :  { %215 = vsyncadd [#allocation4], 4294967040 }
 0x1f0   :  { %156 = vsyncpa [#allocation3], 1 }
 0x1f1   :  { %157 = vsyncpa [#allocation4], 1 }

</bundles_post_ra>
